<compile_context>
chip_gen: v7x
topology: tpu7x:2x2x1
jax: 0.10.0
libtpu: 0.0.40
codegen_flags: <defaults>
</compile_context>

<pallas_src>
import jax
import jax.numpy as jnp
from jax.experimental import pallas as pl
from jax.experimental.pallas import tpu as pltpu

DIM = 6


def mlp4_fused_kernel(x_ref, w_eff_t_ref, o_ref):
    # Single fused matmul: x (B, D) @ W_eff.T (D, D) -> (B, D).
    # W_eff.T is precomputed in the wrapper, so there is no in-kernel
    # transpose / cross-lane shuffle.
    o_ref[...] = jnp.dot(
        x_ref[...], w_eff_t_ref[...], preferred_element_type=jnp.float32
    ).astype(o_ref.dtype)


def mlp4(x, w1, w2, w3, w4):
    """Forward of the 4-layer bias-free MLP: x @ W1.T @ W2.T @ W3.T @ W4.T."""
    B, D = x.shape

    # Fold the bias-free, activation-free chain into one effective matrix:
    #   y = x @ W1.T @ W2.T @ W3.T @ W4.T = x @ (W4 @ W3 @ W2 @ W1).T
    # and pre-transpose it so the kernel never calls .T.
    w_eff_t = (w4 @ w3 @ w2 @ w1).T    # (in, out) = (D, D), kernel-ready layout

    x_spec = pl.BlockSpec((B, D), lambda: (0, 0))
    w_spec = pl.BlockSpec((D, D), lambda: (0, 0))
    o_spec = pl.BlockSpec((B, D), lambda: (0, 0))

    cost = pl.CostEstimate(
        flops=2 * B * D * D,
        transcendentals=0,
        bytes_accessed=(B * D + D * D + B * D) * 4,
    )

    return pl.pallas_call(
        mlp4_fused_kernel,
        out_shape=jax.ShapeDtypeStruct((B, D), jnp.float32),
        grid=(),
        in_specs=[x_spec, w_spec],
        out_specs=o_spec,
        cost_estimate=cost,
    )(x, w_eff_t)


def init_linear_weight(key, out_features, in_features):
    # Mimic torch.nn.Linear default init: U(-1/sqrt(fan_in), 1/sqrt(fan_in)).
    bound = 1.0 / (in_features ** 0.5)
    return jax.random.uniform(
        key, (out_features, in_features), dtype=jnp.float32,
        minval=-bound, maxval=bound)


if __name__ == "__main__":
    key = jax.random.PRNGKey(0)
    kx, k1, k2, k3, k4 = jax.random.split(key, 5)

    batch = 8
    x = jax.random.normal(kx, (batch, DIM), dtype=jnp.float32)
    w1 = init_linear_weight(k1, DIM, DIM)
    w2 = init_linear_weight(k2, DIM, DIM)
    w3 = init_linear_weight(k3, DIM, DIM)
    w4 = init_linear_weight(k4, DIM, DIM)

    out = jax.jit(mlp4)(x, w1, w2, w3, w4)
    out = jax.block_until_ready(out)

    # Reference check against plain JAX applying the 4 layers sequentially
    # (same semantics as the torch module's forward).
    ref = x
    for w in (w1, w2, w3, w4):
        ref = ref @ w.T
    assert jnp.allclose(out, ref, atol=1e-5, rtol=1e-5), "mismatch vs reference"

    print("KERNEL_OK")
</pallas_src>

<mosaic_0001>
module attributes {stable_mosaic.version = 11 : i64} {
  func.func @mlp4_fused_kernel(%arg0: memref<8x6xf32, #tpu.memory_space<vmem>>, %arg1: memref<6x6xf32, #tpu.memory_space<vmem>>, %arg2: memref<8x6xf32, #tpu.memory_space<vmem>>) attributes {dimension_semantics = [], scalar_prefetch = 0 : i64, scratch_operands = 0 : i64, tpu.core_type = #tpu.core_type<tc>} {
    %c0 = arith.constant 0 : index
    %c0_0 = arith.constant 0 : index
    %0 = vector.load %arg0[%c0, %c0_0] : memref<8x6xf32, #tpu.memory_space<vmem>>, vector<8x6xf32>
    %c0_1 = arith.constant 0 : index
    %c0_2 = arith.constant 0 : index
    %1 = vector.load %arg1[%c0_1, %c0_2] : memref<6x6xf32, #tpu.memory_space<vmem>>, vector<6x6xf32>
    %cst = arith.constant dense<0.000000e+00> : vector<8x6xf32>
    %2 = tpu.matmul %0, %1, %cst {dimension_numbers = #tpu.dot_dimension_numbers<[1], [0], [0], [1], [0, 0, 1, 1], [], []>} : vector<8x6xf32>, vector<6x6xf32>, vector<8x6xf32> -> vector<8x6xf32>
    %c0_3 = arith.constant 0 : index
    %c0_4 = arith.constant 0 : index
    %3 = vector.load %arg2[%c0_3, %c0_4] : memref<8x6xf32, #tpu.memory_space<vmem>>, vector<8x6xf32>
    tpu.vector_store %arg2[%c0_3, %c0_4], %2 {strides = array<i32>} : memref<8x6xf32, #tpu.memory_space<vmem>>, vector<8x6xf32>,
    return
  }
}

</mosaic_0001>

<bundles_post_ra>
// kernel: mlp4.1
= control target key start
LH: loop header
LB: loop body
LE: loop exit
PB: predicated region body
PF: predicated region fallthrough
CT: control target
= control target key end

     0   :  { %vm18_vm0 = vcmask 1045504   ;;  %v143_v2 = vmov 0.0   ;;  %vm144_vm1 = vmmov 0   ;;  %vm14_vm2 = vcmask 48128   ;;  %s179_s0 = inlined_call_operand.vmem [shape: f32[8,6], index: 0, kind: input, shape index: {}]   ;;  %s180_s1 = inlined_call_operand.vmem [shape: f32[6,6], index: 1, kind: input, shape index: {}]   ;;  %s181_s2 = inlined_call_operand.hbm [shape: f32[8,6], index: 2, kind: output, shape index: {}]  }
   0x1   :  { %v13_v0 = vld [vmem:[%s180_s1] sm:$0x3f]  ;;  %111 = vmatprep.subr.mxu0 %v143_v2  ;;  %113 = vmatprep.mubr.msk.f32.mxu0 %vm144_vm1, %v143_v2 }
   0x2   :  { %v12_v1 = vld [vmem:[%s179_s0] sm:$0xff] }
   0x3   :  { %7 = vsyncpa [#allocation3], 0  ;;  %112 = vmatpush3.msk.msra.mxu0 %vm18_vm0, %v13_v0  ;;  %s145_s13 = smov [#allocation2]  }
   0x4   :  { %114 = vmatmul.mubr.msk.f32.vlgmr.msra.gmra.mrb[0].mxu0 %vm14_vm2, %v12_v1  ;;  %s99_s14 = sshll.u32 %s145_s13, 4  ;;  %s100_s14 = int_to_ptr.vmem [resolvable:$true] %s99_s14 }
   0x5   :  { %s119_s1 = scalar_lea.vmem %s100_s14, 128  ;;  %p124_p1 = scmp.lt.s32.totalorder %s100_s14, %s100_s14 }
   0x6   :  { %p120_p0 = scmp.ne.s32.totalorder %s100_s14, %s119_s1  ;;  %p125_p2 = scmp.lt.s32.totalorder %s119_s1, %s119_s1 }
   0x8   :  { %p126_p3 = por %p125_p2, %p124_p1 }
   0xa   :  { %p127_p4 = pnand %p126_p3, %p120_p0 }
  0xd7   :  { %v88_v3 = vpop.f32.mrb[0].mxu0 }
  0xd8   :  { %92 = vst.msk [vmem:[#allocation2] sm:$0xff] %vm14_vm2, %v88_v3  ;;  %v115_v4 = vpop.f32.mrb[1].mxu0 }
  0xd9   :  { %130 = shalt.err (!%p127_p4)
}
  0xda   :  { %s131_s16 = scalar_lea.hbm %s181_s2, 128 }
  0xdb   :  { %p132_p5 = scmp.ne.s32.totalorder %s181_s2, %s131_s16  ;;  %p135_p6 = scmp.lt.u32.totalorder %s131_s16, %s181_s2 }
  0xdd   :  { %p137_p7 = pnand %p135_p6, %p132_p5 }
  0xdf   :  { %140 = shalt.err (!%p137_p7)
}
  0xe0   :  { %102 = dma.vmem_to_hbm [thread:$0]  %s100_s14, 128, %s181_s2, [#allocation3]  }
  0xe1   :  { %141 = dma.done.wait [#allocation3], 128  }
  0xe2   :  { %142 = vsyncadd [#allocation3], 4294967168 }
  0xe3   :  { %106 = vsyncpa [#allocation3], 1 }

</bundles_post_ra>
